<compile_context>
chip_gen: v7x
topology: tpu7x:2x2x1
jax: 0.10.0
libtpu: 0.0.40
codegen_flags: <defaults>
</compile_context>

<pallas_src>
import functools

import jax
import jax.numpy as jnp
from jax import lax
from jax.experimental import pallas as pl
from jax.experimental.pallas import tpu as pltpu

LANE = 128


# ----------------------------------------------------------------------------
# Shared gate math (f32, Hp-wide lane spans).
# ----------------------------------------------------------------------------
def _gates(gi, gh, h, b_hn_b, hp):
    r = jax.nn.sigmoid(gi[:, 0:hp] + gh[:, 0:hp])
    z = jax.nn.sigmoid(gi[:, hp:2 * hp] + gh[:, hp:2 * hp])
    n = jnp.tanh(gi[:, 2 * hp:3 * hp] + r * (gh[:, 2 * hp:3 * hp] + b_hn_b))
    return (1.0 - z) * n + z * h


# ----------------------------------------------------------------------------
# Kernels.
# ----------------------------------------------------------------------------
def gru_cell_kernel(x_ref, h_ref, w_x_ref, w_hh_ref, b_gi_ref, b_hn_ref,
                    out_ref):
    """Single GRUCell step; everything resident in VMEM, one gi + one gh dot."""
    hp = h_ref.shape[-1]
    h = h_ref[...].astype(jnp.float32)
    gi = (jnp.dot(x_ref[...], w_x_ref[...], preferred_element_type=jnp.float32)
          + b_gi_ref[...])
    gh = jnp.dot(h, w_hh_ref[...], preferred_element_type=jnp.float32)
    b_hn_b = jnp.broadcast_to(b_hn_ref[...], h.shape)
    out_ref[...] = _gates(gi, gh, h, b_hn_b, hp).astype(out_ref.dtype)


def gru_seq_kernel(x_ref, q0_ref, w_x_ref, w_hh_ref, b_gi_ref, b_hn_ref,
                   out_ref, gi_scratch, *, seq_len, batch):
    """Whole-sequence GRU in ONE grid point.

    Phase 1: batched input-side gate matmul for all T steps (T*B rows).
    Phase 2: serial recurrence -- only h @ W_hh + elementwise per step.
    """
    hp = q0_ref.shape[-1]

    # Phase 1 (non-recurrent): gi for every timestep in a single MXU pass.
    gi_scratch[...] = (jnp.dot(x_ref[...], w_x_ref[...],
                               preferred_element_type=jnp.float32)
                       + b_gi_ref[...])

    # Hoisted loop invariants (weights resident, broadcast done once).
    w_hh = w_hh_ref[...]
    b_hn_b = jnp.broadcast_to(b_hn_ref[...], (batch, hp))
    h0 = q0_ref[...].astype(jnp.float32)

    def body(t, h):
        row = t * batch
        if batch % 8 == 0:                       # sublane-aligned slice hint
            row = pl.multiple_of(row, 8)
        gi = gi_scratch[pl.ds(row, batch), :]
        gh = jnp.dot(h, w_hh, preferred_element_type=jnp.float32)
        h_new = _gates(gi, gh, h, b_hn_b, hp)
        out_ref[pl.ds(row, batch), :] = h_new.astype(out_ref.dtype)
        return h_new

    lax.fori_loop(0, seq_len, body, h0, unroll=True)


# ----------------------------------------------------------------------------
# One-time parameter preparation (hoisted out of the per-step path).
# ----------------------------------------------------------------------------
def prepare_gru_s_params(w_ih, w_hh, b_ih, b_hh, lane=LANE):
    """Split / transpose / lane-pad / fuse PyTorch GRUCell params once.

    w_ih: (3H, D_in), w_hh: (3H, H), b_ih/b_hh: (3H,)  (PyTorch layout).
    Padded columns/rows are zero; combined with a zero-padded initial state
    this keeps the padded lanes of h at exactly 0 through the recurrence.
    """
    three_h, d_in = w_ih.shape
    H = three_h // 3
    Hp = -(-H // lane) * lane                     # round H up to full lane spans

    pad_cols = lambda m: jnp.pad(m, ((0, 0), (0, Hp - H)))
    pad_vec = lambda v: jnp.pad(v, (0, Hp - H))

    gates_ih = [w_ih[g * H:(g + 1) * H] for g in range(3)]   # (H, D_in) each
    gates_hh = [w_hh[g * H:(g + 1) * H] for g in range(3)]   # (H, H) each

    # Single fused input weight: x @ w_x gives [r | z | n] spans, Hp wide each.
    w_x = jnp.concatenate([pad_cols(g.T) for g in gates_ih], axis=1)   # (D_in, 3Hp)
    w_h = jnp.concatenate(
        [jnp.pad(g.T, ((0, Hp - H), (0, Hp - H))) for g in gates_hh],
        axis=1)                                                        # (Hp, 3Hp)

    # Fold b_ih + b_hh for r,z; keep b_hh_n separate (inside r * gh_n).
    b_r = b_ih[0:H] + b_hh[0:H]
    b_z = b_ih[H:2 * H] + b_hh[H:2 * H]
    b_ni = b_ih[2 * H:3 * H]
    b_gi = jnp.concatenate([pad_vec(b_r), pad_vec(b_z),
                            pad_vec(b_ni)]).reshape(1, 3 * Hp)
    b_hn = pad_vec(b_hh[2 * H:3 * H]).reshape(1, Hp)

    return dict(w_x=w_x, w_hh=w_h, b_gi=b_gi, b_hn=b_hn,
                H=H, Hp=Hp, d_in=d_in)


def _cost(T, B, d_in, Hp):
    flops = 2 * T * B * 3 * Hp * (d_in + Hp)
    transcendentals = 3 * T * B * Hp
    bytes_accessed = 4 * (T * B * d_in          # x
                          + B * Hp              # q0
                          + (d_in + Hp) * 3 * Hp + 4 * Hp   # weights + biases
                          + T * B * Hp)         # output
    return pl.CostEstimate(flops=flops, transcendentals=transcendentals,
                           bytes_accessed=bytes_accessed)


# ----------------------------------------------------------------------------
# Wrappers.
# ----------------------------------------------------------------------------
def gru_s_step_padded(q_p, x, params):
    """One GRU step on a lane-padded hidden state (B, Hp); returns (B, Hp).

    Use this when chaining DialogueRNN steps so the pad / [:, :H] slice is paid
    once per dialogue, not once per step.
    """
    B = q_p.shape[0]
    Hp = params["Hp"]
    return pl.pallas_call(
        gru_cell_kernel,
        out_shape=jax.ShapeDtypeStruct((B, Hp), q_p.dtype),
        cost_estimate=_cost(1, B, params["d_in"], Hp),
    )(x, q_p, params["w_x"], params["w_hh"], params["b_gi"], params["b_hn"])


def gru_s_forward(q_l, utter, c, params):
    """GRU_S.forward: q_plus = GRUCell(cat(utter, c, -1), q_l).  Exact step."""
    H, Hp = params["H"], params["Hp"]
    q_p = jnp.pad(q_l, ((0, 0), (0, Hp - H)))
    x = jnp.concatenate((utter, c), axis=-1)
    return gru_s_step_padded(q_p, x, params)[:, :H]


def gru_s_forward_seq(q0, utter_seq, c_seq, params):
    """DialogueRNN-style recurrence: whole sequence in ONE pallas_call,
    single grid point, gi precomputed for all steps, h carried in-kernel."""
    T, B, _ = utter_seq.shape
    H, Hp, d_in = params["H"], params["Hp"], params["d_in"]

    q0_p = jnp.pad(q0, ((0, 0), (0, Hp - H)))
    # One-time concat + flatten (contiguous, essentially free in XLA).
    x_flat = jnp.concatenate((utter_seq, c_seq), axis=-1).reshape(T * B, d_in)

    kernel = functools.partial(gru_seq_kernel, seq_len=T, batch=B)
    out_flat = pl.pallas_call(
        kernel,
        out_shape=jax.ShapeDtypeStruct((T * B, Hp), q0.dtype),
        scratch_shapes=[pltpu.VMEM((T * B, 3 * Hp), jnp.float32)],
        cost_estimate=_cost(T, B, d_in, Hp),
    )(x_flat, q0_p, params["w_x"], params["w_hh"],
      params["b_gi"], params["b_hn"])
    return out_flat.reshape(T, B, Hp)[:, :, :H]


# ----------------------------------------------------------------------------
# Pure-JAX references (torch.nn.GRUCell semantics).
# ----------------------------------------------------------------------------
def reference_gru_s(q_l, utter, c, w_ih, w_hh, b_ih, b_hh):
    x = jnp.concatenate((utter, c), axis=-1)
    H = q_l.shape[-1]
    gi = x @ w_ih.T + b_ih
    gh = q_l @ w_hh.T + b_hh
    i_r, i_z, i_n = gi[:, :H], gi[:, H:2 * H], gi[:, 2 * H:]
    h_r, h_z, h_n = gh[:, :H], gh[:, H:2 * H], gh[:, 2 * H:]
    r = jax.nn.sigmoid(i_r + h_r)
    z = jax.nn.sigmoid(i_z + h_z)
    n = jnp.tanh(i_n + r * h_n)
    return (1.0 - z) * n + z * q_l


def reference_gru_s_seq(q0, utter_seq, c_seq, w_ih, w_hh, b_ih, b_hh):
    h = q0
    outs = []
    for t in range(utter_seq.shape[0]):
        h = reference_gru_s(h, utter_seq[t], c_seq[t], w_ih, w_hh, b_ih, b_hh)
        outs.append(h)
    return jnp.stack(outs)


if __name__ == "__main__":
    # Small shapes consistent with the module: batch=8, utter dim 32,
    # context dim 32 -> input_size=64, hidden_size=32; T=6 utterances.
    B, D_U, D_C, H, T = 8, 32, 32, 32, 6
    IN = D_U + D_C

    key = jax.random.PRNGKey(0)
    k_u, k_c, k_q, k_us, k_cs, k_wih, k_whh, k_bih, k_bhh = jax.random.split(key, 9)

    utter = jax.random.normal(k_u, (B, D_U), dtype=jnp.float32)
    c = jax.random.normal(k_c, (B, D_C), dtype=jnp.float32)
    q_l = jax.random.normal(k_q, (B, H), dtype=jnp.float32)
    utter_seq = jax.random.normal(k_us, (T, B, D_U), dtype=jnp.float32)
    c_seq = jax.random.normal(k_cs, (T, B, D_C), dtype=jnp.float32)

    # PyTorch GRUCell default init: U(-1/sqrt(H), 1/sqrt(H)), layout (3H, *).
    bound = 1.0 / jnp.sqrt(jnp.float32(H))
    w_ih = jax.random.uniform(k_wih, (3 * H, IN), jnp.float32, -bound, bound)
    w_hh = jax.random.uniform(k_whh, (3 * H, H), jnp.float32, -bound, bound)
    b_ih = jax.random.uniform(k_bih, (3 * H,), jnp.float32, -bound, bound)
    b_hh = jax.random.uniform(k_bhh, (3 * H,), jnp.float32, -bound, bound)

    # One-time parameter preparation (split / transpose / pad / bias-fold).
    params = prepare_gru_s_params(w_ih, w_hh, b_ih, b_hh)

    # --- single GRU_S step (matches the module's forward exactly) -----------
    q_plus = gru_s_forward(q_l, utter, c, params)
    q_plus = jax.block_until_ready(q_plus)
    ref = reference_gru_s(q_l, utter, c, w_ih, w_hh, b_ih, b_hh)
    assert q_plus.shape == (B, H)
    assert jnp.allclose(q_plus, ref, atol=2e-5, rtol=2e-5), (
        float(jnp.max(jnp.abs(q_plus - ref))))

    # --- fused sequence (DialogueRNN usage: one pallas_call for all steps) ---
    q_seq = gru_s_forward_seq(q_l, utter_seq, c_seq, params)
    q_seq = jax.block_until_ready(q_seq)
    ref_seq = reference_gru_s_seq(q_l, utter_seq, c_seq, w_ih, w_hh, b_ih, b_hh)
    assert q_seq.shape == (T, B, H)
    assert jnp.allclose(q_seq, ref_seq, atol=1e-4, rtol=1e-4), (
        float(jnp.max(jnp.abs(q_seq - ref_seq))))

    print("KERNEL_OK")
</pallas_src>

<mosaic_0001>
module attributes {stable_mosaic.version = 11 : i64} {
  func.func @gru_cell_kernel(%arg0: memref<8x64xf32, #tpu.memory_space<vmem>>, %arg1: memref<8x128xf32, #tpu.memory_space<vmem>>, %arg2: memref<64x384xf32, #tpu.memory_space<vmem>>, %arg3: memref<128x384xf32, #tpu.memory_space<vmem>>, %arg4: memref<1x384xf32, #tpu.memory_space<vmem>>, %arg5: memref<1x128xf32, #tpu.memory_space<vmem>>, %arg6: memref<8x128xf32, #tpu.memory_space<vmem>>) attributes {dimension_semantics = [], scalar_prefetch = 0 : i64, scratch_operands = 0 : i64, tpu.core_type = #tpu.core_type<tc>} {
    %c0 = arith.constant 0 : index
    %c0_0 = arith.constant 0 : index
    %0 = vector.load %arg1[%c0, %c0_0] : memref<8x128xf32, #tpu.memory_space<vmem>>, vector<8x128xf32>
    %c0_1 = arith.constant 0 : index
    %c0_2 = arith.constant 0 : index
    %1 = vector.load %arg0[%c0_1, %c0_2] : memref<8x64xf32, #tpu.memory_space<vmem>>, vector<8x64xf32>
    %c0_3 = arith.constant 0 : index
    %c0_4 = arith.constant 0 : index
    %2 = vector.load %arg2[%c0_3, %c0_4] : memref<64x384xf32, #tpu.memory_space<vmem>>, vector<64x384xf32>
    %cst = arith.constant dense<0.000000e+00> : vector<8x384xf32>
    %3 = tpu.matmul %1, %2, %cst {dimension_numbers = #tpu.dot_dimension_numbers<[1], [0], [0], [1], [0, 0, 1, 1], [], []>} : vector<8x64xf32>, vector<64x384xf32>, vector<8x384xf32> -> vector<8x384xf32>
    %c0_5 = arith.constant 0 : index
    %c0_6 = arith.constant 0 : index
    %4 = vector.load %arg4[%c0_5, %c0_6] : memref<1x384xf32, #tpu.memory_space<vmem>>, vector<1x384xf32>
    %5 = vector.broadcast %4 : vector<1x384xf32> to vector<8x384xf32>
    %6 = arith.addf %3, %5 : vector<8x384xf32>
    %c0_7 = arith.constant 0 : index
    %c0_8 = arith.constant 0 : index
    %7 = vector.load %arg3[%c0_7, %c0_8] : memref<128x384xf32, #tpu.memory_space<vmem>>, vector<128x384xf32>
    %cst_9 = arith.constant dense<0.000000e+00> : vector<8x384xf32>
    %8 = tpu.matmul %0, %7, %cst_9 {dimension_numbers = #tpu.dot_dimension_numbers<[1], [0], [0], [1], [0, 0, 1, 1], [], []>} : vector<8x128xf32>, vector<128x384xf32>, vector<8x384xf32> -> vector<8x384xf32>
    %c0_10 = arith.constant 0 : index
    %c0_11 = arith.constant 0 : index
    %9 = vector.load %arg5[%c0_10, %c0_11] : memref<1x128xf32, #tpu.memory_space<vmem>>, vector<1x128xf32>
    %10 = vector.shape_cast %9 : vector<1x128xf32> to vector<1x128xf32>
    %11 = vector.broadcast %10 : vector<1x128xf32> to vector<8x128xf32>
    %12 = vector.extract_strided_slice %6 {offsets = [0, 0], sizes = [8, 128], strides = [1, 1]} : vector<8x384xf32> to vector<8x128xf32>
    %13 = vector.extract_strided_slice %8 {offsets = [0, 0], sizes = [8, 128], strides = [1, 1]} : vector<8x384xf32> to vector<8x128xf32>
    %14 = arith.addf %12, %13 : vector<8x128xf32>
    %15 = arith.negf %14 : vector<8x128xf32>
    %16 = math.exp %15 : vector<8x128xf32>
    %cst_12 = arith.constant 1.000000e+00 : f32
    %17 = vector.broadcast %cst_12 : f32 to vector<8x128xf32>
    %18 = arith.addf %17, %16 : vector<8x128xf32>
    %19 = arith.divf %17, %18 : vector<8x128xf32>
    %20 = vector.extract_strided_slice %6 {offsets = [0, 128], sizes = [8, 128], strides = [1, 1]} : vector<8x384xf32> to vector<8x128xf32>
    %21 = vector.extract_strided_slice %8 {offsets = [0, 128], sizes = [8, 128], strides = [1, 1]} : vector<8x384xf32> to vector<8x128xf32>
    %22 = arith.addf %20, %21 : vector<8x128xf32>
    %23 = arith.negf %22 : vector<8x128xf32>
    %24 = math.exp %23 : vector<8x128xf32>
    %cst_13 = arith.constant 1.000000e+00 : f32
    %25 = vector.broadcast %cst_13 : f32 to vector<8x128xf32>
    %26 = arith.addf %25, %24 : vector<8x128xf32>
    %27 = arith.divf %25, %26 : vector<8x128xf32>
    %28 = vector.extract_strided_slice %6 {offsets = [0, 256], sizes = [8, 128], strides = [1, 1]} : vector<8x384xf32> to vector<8x128xf32>
    %29 = vector.extract_strided_slice %8 {offsets = [0, 256], sizes = [8, 128], strides = [1, 1]} : vector<8x384xf32> to vector<8x128xf32>
    %30 = arith.addf %29, %11 : vector<8x128xf32>
    %31 = arith.mulf %19, %30 : vector<8x128xf32>
    %32 = arith.addf %28, %31 : vector<8x128xf32>
    %33 = math.tanh %32 : vector<8x128xf32>
    %cst_14 = arith.constant 1.000000e+00 : f32
    %34 = vector.broadcast %cst_14 : f32 to vector<8x128xf32>
    %35 = arith.subf %34, %27 : vector<8x128xf32>
    %36 = arith.mulf %35, %33 : vector<8x128xf32>
    %37 = arith.mulf %27, %0 : vector<8x128xf32>
    %38 = arith.addf %36, %37 : vector<8x128xf32>
    %c0_15 = arith.constant 0 : index
    %c0_16 = arith.constant 0 : index
    %39 = vector.load %arg6[%c0_15, %c0_16] : memref<8x128xf32, #tpu.memory_space<vmem>>, vector<8x128xf32>
    tpu.vector_store %arg6[%c0_15, %c0_16], %38 {strides = array<i32>} : memref<8x128xf32, #tpu.memory_space<vmem>>, vector<8x128xf32>,
    return
  }
}

</mosaic_0001>

<bundles_post_ra>
// kernel: tpu_custom_call.1
= control target key start
LH: loop header
LB: loop body
LE: loop exit
PB: predicated region body
PF: predicated region fallthrough
CT: control target
= control target key end

     0   :  { %11 = vsyncpa [#allocation3], 0  ;;  %s941_s0 = inlined_call_operand.hbm [shape: f32[8,64], index: 0, kind: input, shape index: {}]   ;;  %s942_s1 = inlined_call_operand.hbm [shape: f32[8,128], index: 1, kind: input, shape index: {}]   ;;  %s943_s2 = inlined_call_operand.hbm [shape: f32[64,384], index: 2, kind: input, shape index: {}]   ;;  %s944_s3 = inlined_call_operand.hbm [shape: f32[128,384], index: 3, kind: input, shape index: {}]   ;;  %s945_s4 = inlined_call_operand.vmem [shape: f32[1,384], index: 4, kind: input, shape index: {}]   ;;  %s946_s5 = inlined_call_operand.vmem [shape: f32[1,128], index: 5, kind: input, shape index: {}]   ;;  %s947_s6 = inlined_call_operand.hbm [shape: f32[8,128], index: 6, kind: output, shape index: {}]  }
   0x1   :  { %12 = vsyncpa [#allocation6], 0 }
   0x2   :  { %13 = vsyncpa [#allocation9], 0 }
   0x3   :  { %14 = vsyncpa [#allocation4], 0  ;;  %s810_s21 = smov [#allocation5]   ;;  %s811_s23 = smov [#allocation2]  }
   0x4   :  { %s31_s22 = sshll.u32 %s810_s21, 4  ;;  %s21_s24 = sshll.u32 %s811_s23, 4  ;;  %s32_s22 = int_to_ptr.vmem [resolvable:$true] %s31_s22  ;;  %s22_s24 = int_to_ptr.vmem [resolvable:$true] %s21_s24 }
   0x5   :  { %s692_s27 = scalar_lea.hbm %s942_s1, 128 }
   0x6   :  { %p693_p0 = scmp.ne.s32.totalorder %s942_s1, %s692_s27  ;;  %p696_p1 = scmp.lt.u32.totalorder %s692_s27, %s942_s1 }
   0x8   :  { %p698_p2 = pnand %p696_p1, %p693_p0 }
   0xa   :  { %701 = shalt.err (!%p698_p2)
}
   0xb   :  { %s702_s8 = scalar_lea.vmem %s32_s22, 128  ;;  %p707_p4 = scmp.lt.s32.totalorder %s32_s22, %s32_s22 }
   0xc   :  { %p703_p3 = scmp.ne.s32.totalorder %s32_s22, %s702_s8  ;;  %p708_p5 = scmp.lt.s32.totalorder %s702_s8, %s702_s8 }
   0xe   :  { %p709_p6 = por %p708_p5, %p707_p4 }
  0x10   :  { %p710_p7 = pnand %p709_p6, %p703_p3 }
  0x12   :  { %713 = shalt.err (!%p710_p7)
}
  0x13   :  { %34 = dma.hbm_to_vmem [thread:$0]  %s942_s1, 128, %s32_s22, [#allocation6]  }
  0x14   :  { %s714_s13 = scalar_lea.hbm %s941_s0, 128 }
  0x15   :  { %p715_p8 = scmp.ne.s32.totalorder %s941_s0, %s714_s13  ;;  %p718_p9 = scmp.lt.u32.totalorder %s714_s13, %s941_s0 }
  0x17   :  { %p720_p10 = pnand %p718_p9, %p715_p8 }
  0x19   :  { %723 = shalt.err (!%p720_p10)
}
  0x1a   :  { %s724_s18 = scalar_lea.vmem %s22_s24, 128  ;;  %p729_p12 = scmp.lt.s32.totalorder %s22_s24, %s22_s24 }
  0x1b   :  { %p725_p11 = scmp.ne.s32.totalorder %s22_s24, %s724_s18  ;;  %p730_p13 = scmp.lt.s32.totalorder %s724_s18, %s724_s18 }
  0x1d   :  { %p731_p0 = por %p730_p13, %p729_p12 }
  0x1f   :  { %p732_p1 = pnand %p731_p0, %p725_p11 }
  0x21   :  { %735 = shalt.err (!%p732_p1)
}
  0x22   :  { %24 = dma.hbm_to_vmem [thread:$0]  %s941_s0, 128, %s22_s24, [#allocation3]  }
  0x23   :  { %s812_s20 = smov [#allocation7]   ;;  %s736_s25 = scalar_lea.hbm %s943_s2, 3072 }
  0x24   :  { %s40_s21 = sshll.u32 %s812_s20, 4  ;;  %p737_p2 = scmp.ne.s32.totalorder %s943_s2, %s736_s25  ;;  %s41_s21 = int_to_ptr.vmem [resolvable:$true] %s40_s21 }
  0x25   :  { %p740_p3 = scmp.lt.u32.totalorder %s736_s25, %s943_s2 }
  0x27   :  { %p742_p4 = pnand %p740_p3, %p737_p2 }
  0x29   :  { %745 = shalt.err (!%p742_p4)
}
  0x2a   :  { %s746_s30 = scalar_lea.vmem %s41_s21, 3072  ;;  %p751_p6 = scmp.lt.s32.totalorder %s41_s21, %s41_s21 }
  0x2b   :  { %p747_p5 = scmp.ne.s32.totalorder %s41_s21, %s746_s30  ;;  %p752_p7 = scmp.lt.s32.totalorder %s746_s30, %s746_s30 }
  0x2d   :  { %p753_p8 = por %p752_p7, %p751_p6 }
  0x2f   :  { %p754_p9 = pnand %p753_p8, %p747_p5 }
  0x31   :  { %757 = shalt.err (!%p754_p9)
}
  0x32   :  { %s813_s0 = smov 384   ;;  %s814_s24 = smov 24  }
  0x33   :  { %46 = dma.hbm_to_vmem [thread:$0]  %s943_s2, 3072, %s41_s21, [#allocation6], %s813_s0, %s813_s0, %s814_s24  }
  0x34   :  { %s815_s9 = smov [#allocation8]   ;;  %s758_s13 = scalar_lea.hbm %s944_s3, 6144 }
  0x35   :  { %s52_s10 = sshll.u32 %s815_s9, 4  ;;  %p759_p10 = scmp.ne.s32.totalorder %s944_s3, %s758_s13  ;;  %s53_s10 = int_to_ptr.vmem [resolvable:$true] %s52_s10 }
  0x36   :  { %p762_p11 = scmp.lt.u32.totalorder %s758_s13, %s944_s3 }
  0x38   :  { %p764_p12 = pnand %p762_p11, %p759_p10 }
  0x3a   :  { %767 = shalt.err (!%p764_p12)
}
  0x3b   :  { %s768_s18 = scalar_lea.vmem %s53_s10, 6144  ;;  %p773_p0 = scmp.lt.s32.totalorder %s53_s10, %s53_s10 }
  0x3c   :  { %p769_p13 = scmp.ne.s32.totalorder %s53_s10, %s768_s18  ;;  %p774_p1 = scmp.lt.s32.totalorder %s768_s18, %s768_s18 }
  0x3e   :  { %p775_p2 = por %p774_p1, %p773_p0 }
  0x40   :  { %p776_p3 = pnand %p775_p2, %p769_p13 }
  0x42   :  { %779 = shalt.err (!%p776_p3)
}
  0x43   :  { %58 = dma.hbm_to_vmem [thread:$0]  %s944_s3, 6144, %s53_s10, [#allocation9], %s813_s0, %s813_s0, %s814_s24  }
  0x44   :  { %802 = dma.done.wait [#allocation3], 128  }
  0x45   :  { %803 = vsyncadd [#allocation3], 4294967168 }
  0x46   :  { %804 = dma.done.wait [#allocation6], 3200  }
  0x47   :  { %805 = vsyncadd [#allocation6], 4294964096 }
  0x48   :  { %806 = dma.done.wait [#allocation9], 6144  }
  0x49   :  { %807 = vsyncadd [#allocation9], 4294961152  ;;  %v816_v0 = vmov 0.0   ;;  %v817_v1 = vmov 0.0|0.0   ;;  %vm818_vm0 = vmmov 0   ;;  %v78_v2 = vld [vmem:[#allocation7 + $0x8] sm:$0xff] }
  0x4a   :  { %186 = vmatprep.mubr.f32.mxu0 %v816_v0  ;;  %600 = vmatprep.subr.bf16.mxu1 %v817_v1  ;;  %v81_v3 = vld [vmem:[#allocation7 + $0x20] sm:$0xff]  ;;  %v80_v6 = vld [vmem:[#allocation7 + $0x18] sm:$0xff]  ;;  %v87_v8 = vld [vmem:[#allocation7 + $0x50] sm:$0xff]  ;;  %vm118_vm1 = vcmask 523264   ;;  %s819_s21 = smov [#allocation10]  }
  0x4b   :  { %546 = vmatprep.mubr.msk.f32.mxu1 %vm818_vm0, %v816_v0  ;;  %v77_v4 = vld [vmem:[#allocation7] sm:$0xff]  ;;  %v584_v5 = vpack.c.bf16 %v81_v3, %v78_v2  ;;  %v84_v7 = vld [vmem:[#allocation7 + $0x38] sm:$0xff]  ;;  %v83_v11 = vld [vmem:[#allocation7 + $0x30] sm:$0xff]  ;;  %s488_s22 = sshll.u32 %s819_s21, 4  ;;  %s489_s22 = int_to_ptr.vmem [resolvable:$true] %s488_s22 }
  0x4c   :  { %v586_v9 = vpack.c.bf16 %v80_v6, %v77_v4  ;;  %v588_v10 = vpack.c.bf16 %v87_v8, %v84_v7  ;;  %v86_v12 = vld [vmem:[#allocation7 + $0x48] sm:$0xff]  ;;  %v93_v14 = vld [vmem:[#allocation7 + $0x80] sm:$0xff]  ;;  %v92_v18 = vld [vmem:[#allocation7 + $0x78] sm:$0xff]  ;;  %p785_p5 = scmp.lt.s32.totalorder %s489_s22, %s489_s22 }
  0x4d   :  { %v90_v13 = vld [vmem:[#allocation7 + $0x68] sm:$0xff]  ;;  %585 = vmatprep.subr.bf16.mxu0 %v584_v5  ;;  %v590_v15 = vpack.c.bf16 %v86_v12, %v83_v11  ;;  %v89_v17 = vld [vmem:[#allocation7 + $0x60] sm:$0xff]  ;;  %v96_v19 = vld [vmem:[#allocation7 + $0x98] sm:$0xff] }
  0x4e   :  { %587 = vmatpush1.bf16.msra.mxu0 %v586_v9  ;;  %v592_v16 = vpack.c.bf16 %v93_v14, %v90_v13  ;;  %v99_v20 = vld [vmem:[#allocation7 + $0xb0] sm:$0xff]  ;;  %v594_v21 = vpack.c.bf16 %v92_v18, %v89_v17  ;;  %v98_v24 = vld [vmem:[#allocation7 + $0xa8] sm:$0xff]  ;;  %v267_v27 = vld [vmem:[#allocation8 + $0x20] sm:$0xff] }
  0x4f   :  { %589 = vmatprep.subr.bf16.mxu0 %v588_v10  ;;  %v596_v22 = vpack.c.bf16 %v99_v20, %v96_v19  ;;  %v95_v23 = vld [vmem:[#allocation7 + $0x90] sm:$0xff]  ;;  %v264_v26 = vld [vmem:[#allocation8 + $0x8] sm:$0xff]  ;;  %v85_v30 = vld [vmem:[#allocation7 + $0x40] sm:$0xff] }
  0x50   :  { %v79_v25 = vld [vmem:[#allocation7 + $0x10] sm:$0xff]  ;;  %v82_v28 = vld [vmem:[#allocation7 + $0x28] sm:$0xff]  ;;  %v598_v31 = vpack.c.bf16 %v98_v24, %v95_v23  ;;  %v88_v32 = vld [vmem:[#allocation7 + $0x58] sm:$0xff]  ;;  %v612_v33 = vpack.c.bf16 %v267_v27, %v264_v26 }
  0x51   :  { %v601_v29 = vpack.c.bf16 %v82_v28, %v79_v25  ;;  %v263_v34 = vld [vmem:[#allocation8] sm:$0xff]  ;;  %v266_v35 = vld [vmem:[#allocation8 + $0x18] sm:$0xff]  ;;  %v604_v37 = vpack.c.bf16 %v88_v32, %v85_v30  ;;  %v273_v38 = vld [vmem:[#allocation8 + $0x50] sm:$0xff] }
  0x52   :  { %591 = vmatpush1.bf16.msra.mxu0 %v590_v15  ;;  %v270_v36 = vld [vmem:[#allocation8 + $0x38] sm:$0xff]  ;;  %v91_v39 = vld [vmem:[#allocation7 + $0x70] sm:$0xff]  ;;  %v94_v40 = vld [vmem:[#allocation7 + $0x88] sm:$0xff]  ;;  %v614_v42 = vpack.c.bf16 %v266_v35, %v263_v34 }
  0x53   :  { %593 = vmatprep.subr.bf16.mxu0 %v592_v16  ;;  %602 = vmatpush3.bf16.msra.mxu1 %v601_v29  ;;  %v76_v41 = vld [vmem:[#allocation2] sm:$0xff]  ;;  %v616_v43 = vpack.c.bf16 %v273_v38, %v270_v36  ;;  %v272_v45 = vld [vmem:[#allocation8 + $0x48] sm:$0xff]  ;;  %v607_v47 = vpack.c.bf16 %v94_v40, %v91_v39  ;;  %v279_v48 = vld [vmem:[#allocation8 + $0x80] sm:$0xff] }
  0x54   :  { %603 = vmatprep.subr.bf16.mxu1 %v817_v1  ;;  %v269_v44 = vld [vmem:[#allocation8 + $0x30] sm:$0xff]  ;;  %v276_v46 = vld [vmem:[#allocation8 + $0x68] sm:$0xff]  ;;  %v97_v49 = vld [vmem:[#allocation7 + $0xa0] sm:$0xff] }
  0x55   :  { %v100_v50 = vld [vmem:[#allocation7 + $0xb8] sm:$0xff]  ;;  %v618_v51 = vpack.c.bf16 %v272_v45, %v269_v44  ;;  %v620_v52 = vpack.c.bf16 %v279_v48, %v276_v46  ;;  %v275_v53 = vld [vmem:[#allocation8 + $0x60] sm:$0xff]  ;;  %v285_v57 = vld [vmem:[#allocation8 + $0xb0] sm:$0xff] }
  0x56   :  { %595 = vmatpush1.bf16.msra.mxu0 %v594_v21  ;;  %v278_v54 = vld [vmem:[#allocation8 + $0x78] sm:$0xff]  ;;  %v610_v56 = vpack.c.bf16 %v100_v50, %v97_v49  ;;  %v265_v58 = vld [vmem:[#allocation8 + $0x10] sm:$0xff]  ;;  %v268_v59 = vld [vmem:[#allocation8 + $0x28] sm:$0xff] }
  0x57   :  { %597 = vmatprep.subr.bf16.mxu0 %v596_v22  ;;  %605 = vmatpush3.bf16.msra.mxu1 %v604_v37  ;;  %v282_v55 = vld [vmem:[#allocation8 + $0x98] sm:$0xff]  ;;  %v622_v60 = vpack.c.bf16 %v278_v54, %v275_v53  ;;  %v281_v62 = vld [vmem:[#allocation8 + $0x90] sm:$0xff]  ;;  %v284_v63 = vld [vmem:[#allocation8 + $0xa8] sm:$0xff]  ;;  %v645_v3 = vpack.c.bf16 %v268_v59, %v265_v58 }
  0x58   :  { %606 = vmatprep.subr.bf16.mxu1 %v817_v1  ;;  %v624_v61 = vpack.c.bf16 %v285_v57, %v282_v55  ;;  %v288_v2 = vld [vmem:[#allocation8 + $0xc8] sm:$0xff]  ;;  %v291_v4 = vld [vmem:[#allocation8 + $0xe0] sm:$0xff]  ;;  %v274_v6 = vld [vmem:[#allocation8 + $0x58] sm:$0xff]  ;;  %v626_v7 = vpack.c.bf16 %v284_v63, %v281_v62 }
  0x59   :  { %v271_v5 = vld [vmem:[#allocation8 + $0x40] sm:$0xff]  ;;  %v628_v8 = vpack.c.bf16 %v291_v4, %v288_v2  ;;  %v290_v10 = vld [vmem:[#allocation8 + $0xd8] sm:$0xff]  ;;  %v297_v13 = vld [vmem:[#allocation8 + $0x110] sm:$0xff] }
  0x5a   :  { %599 = vmatpush1.bf16.msra.mxu0 %v598_v31  ;;  %v287_v9 = vld [vmem:[#allocation8 + $0xc0] sm:$0xff]  ;;  %v294_v11 = vld [vmem:[#allocation8 + $0xf8] sm:$0xff]  ;;  %v648_v12 = vpack.c.bf16 %v274_v6, %v271_v5  ;;  %v277_v14 = vld [vmem:[#allocation8 + $0x70] sm:$0xff] }
  0x5b   :  { %613 = vmatprep.subr.bf16.mxu0 %v612_v33  ;;  %608 = vmatpush3.bf16.msra.mxu1 %v607_v47  ;;  %v280_v15 = vld [vmem:[#allocation8 + $0x88] sm:$0xff]  ;;  %v630_v16 = vpack.c.bf16 %v290_v10, %v287_v9  ;;  %v632_v17 = vpack.c.bf16 %v297_v13, %v294_v11  ;;  %v293_v18 = vld [vmem:[#allocation8 + $0xf0] sm:$0xff]  ;;  %v303_v22 = vld [vmem:[#allocation8 + $0x140] sm:$0xff] }
  0x5c   :  { %609 = vmatprep.subr.bf16.mxu1 %v817_v1  ;;  %v296_v19 = vld [vmem:[#allocation8 + $0x108] sm:$0xff]  ;;  %v651_v21 = vpack.c.bf16 %v280_v15, %v277_v14  ;;  %v283_v23 = vld [vmem:[#allocation8 + $0xa0] sm:$0xff]  ;;  %v286_v24 = vld [vmem:[#allocation8 + $0xb8] sm:$0xff] }
  0x5d   :  { %499 = vmatmul.mubr.msk.f32.vlgmr.msra.gmra.mrb[0].mxu0 %vm118_vm1, %v76_v41  ;;  %v300_v20 = vld [vmem:[#allocation8 + $0x128] sm:$0xff]  ;;  %v634_v25 = vpack.c.bf16 %v296_v19, %v293_v18  ;;  %v299_v27 = vld [vmem:[#allocation8 + $0x120] sm:$0xff]  ;;  %v306_v28 = vld [vmem:[#allocation8 + $0x158] sm:$0xff]  ;;  %v654_v29 = vpack.c.bf16 %v286_v24, %v283_v23 }
  0x5e   :  { %615 = vmatpush1.bf16.msra.mxu0 %v614_v42  ;;  %375 = vmatprep.mubr.f32.mxu0 %v816_v0  ;;  %v636_v26 = vpack.c.bf16 %v303_v22, %v300_v20  ;;  %v309_v30 = vld [vmem:[#allocation8 + $0x170] sm:$0xff]  ;;  %v292_v32 = vld [vmem:[#allocation8 + $0xe8] sm:$0xff]  ;;  %v295_v38 = vld [vmem:[#allocation8 + $0x100] sm:$0xff] }
  0x5f   :  { %617 = vmatprep.subr.bf16.mxu0 %v616_v43  ;;  %611 = vmatpush3.bf16.msra.mxu1 %v610_v56  ;;  %v289_v31 = vld [vmem:[#allocation8 + $0xd0] sm:$0xff]  ;;  %v640_v34 = vpack.c.bf16 %v309_v30, %v306_v28  ;;  %v308_v36 = vld [vmem:[#allocation8 + $0x168] sm:$0xff]  ;;  %v298_v39 = vld [vmem:[#allocation8 + $0x118] sm:$0xff] }
  0x60   :  { %644 = vmatprep.subr.bf16.mxu1 %v817_v1  ;;  %v305_v35 = vld [vmem:[#allocation8 + $0x150] sm:$0xff]  ;;  %v657_v37 = vpack.c.bf16 %v292_v32, %v289_v31  ;;  %v304_v43 = vld [vmem:[#allocation8 + $0x148] sm:$0xff]  ;;  %v75_v44 = vld [vmem:[#allocation5] sm:$0xff] }
  0x61   :  { %v642_v40 = vpack.c.bf16 %v308_v36, %v305_v35  ;;  %v301_v42 = vld [vmem:[#allocation8 + $0x130] sm:$0xff]  ;;  %v307_v46 = vld [vmem:[#allocation8 + $0x160] sm:$0xff]  ;;  %v310_v47 = vld [vmem:[#allocation8 + $0x178] sm:$0xff] }
  0x62   :  { %619 = vmatpush1.bf16.msra.mxu0 %v618_v51  ;;  %547 = vmatmul.mubr.msk.f32.vlgmr.msra.gmra.mrb[0].mxu1 %vm118_vm1, %v76_v41  ;;  %v660_v41 = vpack.c.bf16 %v298_v39, %v295_v38  ;;  %v663_v45 = vpack.c.bf16 %v304_v43, %v301_v42  ;;  %v666_v48 = vpack.c.bf16 %v310_v47, %v307_v46  ;;  %v103_v51 = vlaneseq  ;;  %v101_v54 = vld [vmem:[%s945_s4] sm:$0x7] }
  0x63   :  { %621 = vmatprep.subr.bf16.mxu0 %v620_v52  ;;  %646 = vmatpush3.bf16.msra.mxu1 %v645_v3 }
  0x64   :  { %647 = vmatprep.subr.bf16.mxu1 %v817_v1  ;;  %581 = vmatprep.mubr.msk.f32.mxu1 %vm818_vm0, %v816_v0  ;;  %v302_v0 = vld [vmem:[#allocation8 + $0x138] sm:$0xff]  ;;  %v104_v52 = vshrl.u32 %v103_v51, 7 }
  0x65   :  { %v638_v33 = vpack.c.bf16 %v302_v0, %v299_v27 }
  0x66   :  { %623 = vmatpush1.bf16.msra.mxu0 %v622_v60  ;;  %v105_v53 = vsub.s32 0, %v104_v52  ;;  %v109_v55 = vsub.s32 1, %v104_v52  ;;  %v113_v5 = vsub.s32 2, %v104_v52 }
  0x67   :  { %625 = vmatprep.subr.bf16.mxu0 %v624_v61  ;;  %649 = vmatpush3.bf16.msra.mxu1 %v648_v12 }
  0x68   :  { %650 = vmatprep.subr.bf16.mxu1 %v817_v1  ;;  %v106_v56 = vrot.slane %v101_v54, %v105_v53  ;;  %v110_v58 = vrot.slane %v101_v54, %v109_v55 }
  0x6a   :  { %627 = vmatpush1.bf16.msra.mxu0 %v626_v7  ;;  %v501_v7 = vld [vmem:[%s946_s5] ss:$0 sm:$0xff]  ;;  %s780_s5 = scalar_lea.vmem %s489_s22, 128 }
  0x6b   :  { %629 = vmatprep.subr.bf16.mxu0 %v628_v8  ;;  %652 = vmatpush3.bf16.msra.mxu1 %v651_v21  ;;  %v114_v8 = vrot.slane %v101_v54, %v113_v5  ;;  %p781_p4 = scmp.ne.s32.totalorder %s489_s22, %s780_s5  ;;  %p786_p6 = scmp.lt.s32.totalorder %s780_s5, %s780_s5 }
  0x6c   :  { %653 = vmatprep.subr.bf16.mxu1 %v817_v1 }
  0x6d   :  { %p787_p7 = por %p786_p6, %p785_p5 }
  0x6e   :  { %631 = vmatpush1.bf16.msra.mxu0 %v630_v16 }
  0x6f   :  { %633 = vmatprep.subr.bf16.mxu0 %v632_v17  ;;  %655 = vmatpush3.bf16.msra.mxu1 %v654_v29  ;;  %p788_p8 = pnand %p787_p7, %p781_p4 }
  0x70   :  { %656 = vmatprep.subr.bf16.mxu1 %v817_v1 }
  0x72   :  { %635 = vmatpush1.bf16.msra.mxu0 %v634_v25 }
  0x73   :  { %637 = vmatprep.subr.bf16.mxu0 %v636_v26  ;;  %658 = vmatpush3.bf16.msra.mxu1 %v657_v37 }
  0x74   :  { %659 = vmatprep.subr.bf16.mxu1 %v817_v1 }
  0x76   :  { %639 = vmatpush1.bf16.msra.mxu0 %v638_v33 }
  0x77   :  { %641 = vmatprep.subr.bf16.mxu0 %v640_v34  ;;  %661 = vmatpush3.bf16.msra.mxu1 %v660_v41 }
  0x78   :  { %662 = vmatprep.subr.bf16.mxu1 %v817_v1 }
  0x7a   :  { %643 = vmatpush1.bf16.msra.mxu0 %v642_v40 }
  0x7b   :  { %664 = vmatpush3.bf16.msra.mxu1 %v663_v45 }
  0x7c   :  { %665 = vmatprep.subr.bf16.mxu1 %v817_v1 }
  0x7d   :  { %376 = vmatmul.mubr.f32.vlgmr.msra.gmra.mrb[0].mxu0 %v75_v44 }
  0x7f   :  { %667 = vmatpush3.bf16.msra.mxu1 %v666_v48 }
  0x82   :  { %582 = vmatmul.mubr.f32.vlgmr.msra.gmra.mrb[2].mxu1 %v75_v44 }
 0x135   :  { %v259_v49 = vpop.f32.mrb[0].mxu1 }
 0x136   :  { %v548_v50 = vpop.f32.mrb[1].mxu1  ;;  %v260_v12 = vadd.f32 %v259_v49, %v114_v8 }
 0x150   :  { %v377_v57 = vpop.f32.mrb[0].mxu0 }
 0x151   :  { %v668_v59 = vadd.f32 %v377_v57, %v106_v56  ;;  %v379_v60 = vpop.f32.mrb[1].mxu0 }
 0x152   :  { %v669_v62 = vadd.f32 %v379_v60, %v110_v58 }
 0x153   :  { %v502_v61 = vmul.f32 -1.442695, %v668_v59 }
 0x154   :  { %v503_v1 = vmul.f32 -1.442695, %v669_v62 }
 0x155   :  { %682 = vpow2.f32 %v502_v61  ;;  %v448_v63 = vpop.f32.mrb[2].mxu1 }
 0x156   :  { %v583_v2 = vpop.f32.mrb[3].mxu1  ;;  %684 = vpow2.f32 %v503_v1  ;;  %v473_v10 = vadd.f32 %v501_v7, %v448_v63 }
 0x15f   :  { %v683_v3 = vpop.eup %682 }
 0x160   :  { %v463_v4 = vadd.f32 1.0, %v683_v3  ;;  %v685_v6 = vpop.eup %684 }
 0x161   :  { %v470_v9 = vadd.f32 1.0, %v685_v6 }
 0x162   :  { %686 = vrcp.f32 %v463_v4 }
 0x163   :  { %688 = vrcp.f32 %v470_v9 }
 0x16c   :  { %v687_v11 = vpop.eup %686 }
 0x16d   :  { %v474_v13 = vmul.f32 %v687_v11, %v473_v10  ;;  %v689_v15 = vpop.eup %688 }
 0x16e   :  { %v477_v16 = vsub.f32 1.0, %v689_v15  ;;  %v479_v19 = vmul.f32 %v689_v15, %v75_v44 }
 0x16f   :  { %v475_v14 = vadd.f32 %v474_v13, %v260_v12 }
 0x171   :  { %690 = vtanh.f32 %v475_v14 }
 0x17b   :  { %v691_v17 = vpop.eup %690 }
 0x17c   :  { %v478_v18 = vmul.f32 %v691_v17, %v477_v16 }
 0x17e   :  { %v480_v20 = vadd.f32 %v479_v19, %v478_v18 }
 0x180   :  { %481 = vst [vmem:[#allocation10] sm:$0xff] %v480_v20 }
 0x181   :  { %791 = shalt.err (!%p788_p8)
}
 0x182   :  { %s792_s26 = scalar_lea.hbm %s947_s6, 128 }
 0x183   :  { %p793_p9 = scmp.ne.s32.totalorder %s947_s6, %s792_s26  ;;  %p796_p10 = scmp.lt.u32.totalorder %s792_s26, %s947_s6 }
 0x185   :  { %p798_p11 = pnand %p796_p10, %p793_p9 }
 0x187   :  { %801 = shalt.err (!%p798_p11)
}
 0x188   :  { %491 = dma.vmem_to_hbm [thread:$0]  %s489_s22, 128, %s947_s6, [#allocation4]  }
 0x189   :  { %808 = dma.done.wait [#allocation4], 128  }
 0x18a   :  { %809 = vsyncadd [#allocation4], 4294967168 }
 0x18b   :  { %495 = vsyncpa [#allocation3], 1 }
 0x18c   :  { %496 = vsyncpa [#allocation6], 1 }
 0x18d   :  { %497 = vsyncpa [#allocation9], 1 }
 0x18e   :  { %498 = vsyncpa [#allocation4], 1 }

</bundles_post_ra>
